<compile_context>
chip_gen: v5e
topology: v5e:2x2
jax: 0.10.0
libtpu: 0.0.40
codegen_flags: <defaults>
</compile_context>

<pallas_src>
import jax
import jax.numpy as jnp
from jax.experimental import pallas as pl
from jax.experimental.pallas import tpu as pltpu

N_HOSTS = 16
N_FEATS = 3 * N_HOSTS                               # 48
N_WINDOW = 1
N_LATENT = N_FEATS                                  # 48
N_HIDDEN = 32
N_IN = N_WINDOW * N_FEATS + N_HOSTS * N_HOSTS       # 304

# PyTorch LeakyReLU(True): negative_slope == True -> 1.0 (identity activation).
NEG_SLOPE = 1.0

# Packed slab layout (shared by activations and parameters): (8, 128) float32 = 1 vreg.
#   flat[0:48]    = t.view(-1)            | w_fused[0:48]
#   flat[48:304]  = s.view(-1)            | w_fused[48:304]
#   flat[304]     = 1.0 (bias carrier)    | b_fused
#   flat[305:]    = 0.0                   | 0.0
# reshaped row-major to (8, 128).
SLAB_SHAPE = (8, 128)
SLAB_ELEMS = SLAB_SHAPE[0] * SLAB_SHAPE[1]          # 1024


def _discriminator_kernel(x_ref, w_ref, o_ref):
    # One whole-vreg VPU multiply (activations and weights share the exact layout,
    # padding is zero in both so the padded lanes contribute nothing).
    prod = x_ref[...] * w_ref[...]                                   # (8, 128)
    # Single reduction chain: lane reduce then sublane reduce -> (1, 1).
    acc = jnp.sum(jnp.sum(prod, axis=1, keepdims=True), axis=0, keepdims=True)
    # Stable sigmoid: sigmoid(z) = 0.5 * (tanh(z/2) + 1)  (single EUP tanh).
    o_ref[...] = 0.5 * (jnp.tanh(0.5 * acc) + 1.0)


def _pack_activations(t, s):
    """Pack t (1,48), s (16,16) and the constant 1.0 bias carrier into one (8,128) slab."""
    flat = jnp.concatenate(
        [t.reshape(-1).astype(jnp.float32),
         s.reshape(-1).astype(jnp.float32),
         jnp.ones((1,), jnp.float32)]
    )                                                                 # (305,)
    flat = jnp.pad(flat, (0, SLAB_ELEMS - flat.shape[0]))             # (1024,)
    return flat.reshape(SLAB_SHAPE)


@jax.jit
def dragon_simulator_16_forward(t, s, w_slab):
    """t: (n_window, n_feats) = (1, 48); s: (n_hosts, n_hosts) = (16, 16).
    w_slab: packed fused parameters from fuse_params().
    Returns the score with shape (1,), matching torch's score.view(-1)."""
    x_slab = _pack_activations(t, s)

    vmem = pl.BlockSpec(memory_space=pltpu.MemorySpace.VMEM)
    out = pl.pallas_call(
        _discriminator_kernel,
        out_shape=jax.ShapeDtypeStruct((1, 1), jnp.float32),
        in_specs=[vmem, vmem],
        out_specs=vmem,
    )(x_slab, w_slab)
    return out.reshape(-1)


def init_params(key):
    """Original (un-fused) parameters; weights stored as (in_features, out_features)."""
    ks = jax.random.split(key, 6)

    def lin(kw, kb, fan_in, fan_out):
        bound = 1.0 / jnp.sqrt(fan_in)
        w = jax.random.uniform(kw, (fan_in, fan_out), jnp.float32, -bound, bound)
        b = jax.random.uniform(kb, (1, fan_out), jnp.float32, -bound, bound)
        return w, b

    w1, b1 = lin(ks[0], ks[1], N_IN, N_LATENT)
    w2, b2 = lin(ks[2], ks[3], N_LATENT, N_HIDDEN)
    w3, b3 = lin(ks[4], ks[5], N_HIDDEN, 1)
    return (w1, b1, w2, b2, w3, b3)


def fuse_params(params):
    """Collapse the affine MLP (slope == 1.0) into one (304,) weight + scalar bias and
    pack them into a single (8,128) slab matching the activation-slab layout."""
    assert NEG_SLOPE == 1.0, "algebraic collapse requires identity activation"
    w1, b1, w2, b2, w3, b3 = params
    w_fused = (w1 @ w2 @ w3).reshape(-1)                     # (304,)
    b_fused = (b1 @ w2 @ w3 + b2 @ w3 + b3).reshape(-1)      # (1,)

    flat = jnp.concatenate([w_fused, b_fused])               # (305,) matches x-slab layout
    flat = jnp.pad(flat, (0, SLAB_ELEMS - flat.shape[0]))    # (1024,)
    return flat.reshape(SLAB_SHAPE)


def reference_forward(t, s, params):
    """Pure-JAX reference of the original (un-collapsed) PyTorch forward."""
    w1, b1, w2, b2, w3, b3 = params
    x = jnp.concatenate([t.reshape(-1), s.reshape(-1)]).reshape(1, N_IN)
    h = x @ w1 + b1
    h = jnp.where(h >= 0, h, NEG_SLOPE * h)
    h = h @ w2 + b2
    h = jnp.where(h >= 0, h, NEG_SLOPE * h)
    h = h @ w3 + b3
    return jax.nn.sigmoid(h).reshape(-1)


if __name__ == "__main__":
    key = jax.random.PRNGKey(0)
    k_t, k_s, k_p = jax.random.split(key, 3)

    t = jax.random.normal(k_t, (N_WINDOW, N_FEATS), jnp.float32)   # (1, 48)
    s = jax.random.normal(k_s, (N_HOSTS, N_HOSTS), jnp.float32)    # (16, 16)
    params = init_params(k_p)
    w_slab = fuse_params(params)

    score = dragon_simulator_16_forward(t, s, w_slab)
    jax.block_until_ready(score)

    ref = reference_forward(t, s, params)
    assert score.shape == (1,)
    assert bool(jnp.all((score >= 0.0) & (score <= 1.0)))
    assert bool(jnp.allclose(score, ref, atol=1e-5, rtol=1e-5)), (score, ref)
    print("KERNEL_OK")
</pallas_src>

<mosaic_0001>
module attributes {stable_mosaic.version = 11 : i64} {
  func.func @_discriminator_kernel(%arg0: memref<8x128xf32, #tpu.memory_space<vmem>>, %arg1: memref<8x128xf32, #tpu.memory_space<vmem>>, %arg2: memref<1x1xf32, #tpu.memory_space<vmem>>) attributes {dimension_semantics = [], scalar_prefetch = 0 : i64, scratch_operands = 0 : i64, tpu.core_type = #tpu.core_type<tc>} {
    %c0 = arith.constant 0 : index
    %c0_0 = arith.constant 0 : index
    %0 = vector.load %arg0[%c0, %c0_0] : memref<8x128xf32, #tpu.memory_space<vmem>>, vector<8x128xf32>
    %c0_1 = arith.constant 0 : index
    %c0_2 = arith.constant 0 : index
    %1 = vector.load %arg1[%c0_1, %c0_2] : memref<8x128xf32, #tpu.memory_space<vmem>>, vector<8x128xf32>
    %2 = arith.mulf %0, %1 : vector<8x128xf32>
    %cst = arith.constant dense<0.000000e+00> : vector<8xf32>
    %3 = vector.multi_reduction <add>, %2, %cst [1] : vector<8x128xf32> to vector<8xf32>
    %4 = vector.shape_cast %3 : vector<8xf32> to vector<8x1xf32>
    %cst_3 = arith.constant dense<0.000000e+00> : vector<1xf32>
    %5 = vector.multi_reduction <add>, %4, %cst_3 [0] : vector<8x1xf32> to vector<1xf32>
    %6 = vector.shape_cast %5 : vector<1xf32> to vector<1x1xf32>
    %cst_4 = arith.constant 5.000000e-01 : f32
    %7 = vector.broadcast %cst_4 : f32 to vector<1x1xf32>
    %8 = arith.mulf %7, %6 : vector<1x1xf32>
    %9 = math.tanh %8 : vector<1x1xf32>
    %cst_5 = arith.constant 1.000000e+00 : f32
    %10 = vector.broadcast %cst_5 : f32 to vector<1x1xf32>
    %11 = arith.addf %9, %10 : vector<1x1xf32>
    %cst_6 = arith.constant 5.000000e-01 : f32
    %12 = vector.broadcast %cst_6 : f32 to vector<1x1xf32>
    %13 = arith.mulf %12, %11 : vector<1x1xf32>
    %c0_7 = arith.constant 0 : index
    %c0_8 = arith.constant 0 : index
    %14 = vector.load %arg2[%c0_7, %c0_8] : memref<1x1xf32, #tpu.memory_space<vmem>>, vector<1x1xf32>
    tpu.vector_store %arg2[%c0_7, %c0_8], %13 {strides = array<i32>} : memref<1x1xf32, #tpu.memory_space<vmem>>, vector<1x1xf32>,
    return
  }
}

</mosaic_0001>

<bundles_post_ra>
// kernel: dragon_simulator_16_forward.1
= control target key start
LH: loop header
LB: loop body
LE: loop exit
PB: predicated region body
PF: predicated region fallthrough
CT: control target
= control target key end

     0   :  { %s99_s0 = inlined_call_operand.vmem [shape: f32[8,128], index: 0, kind: input, shape index: {}]   ;;  %s100_s1 = inlined_call_operand.vmem [shape: f32[8,128], index: 1, kind: input, shape index: {}]   ;;  %s101_s2 = inlined_call_operand.hbm [shape: f32[1,1], index: 2, kind: output, shape index: {}]  }
   0x1   :  { %v12_v0 = vld [vmem:[%s99_s0] sm:$0xff] }
   0x2   :  { %v13_v1 = vld [vmem:[%s100_s1] sm:$0xff] }
   0x3   :  { %7 = vsyncpa [#allocation3], 0  ;;  %v14_v2 = vmul.f32 %v13_v1, %v12_v0  ;;  %s74_s13 = smov [#allocation2]   ;;  %s36_s16 = sshll.u32 %s101_s2, 4  ;;  %vm27_vm0 = vcmask 0   ;;  %s37_s16 = int_to_ptr.hbm [resolvable:$true] %s36_s16 }
   0x4   :  { %s34_s14 = sshll.u32 %s74_s13, 4  ;;  %s35_s14 = int_to_ptr.vmem [resolvable:$true] %s34_s14 }
   0x5   :  { %15 = vadd.xlane.f32.xlu0 %v14_v2 }
  0x78   :  { %v16_v3 = vpop.xlane.xlu0 %15 }
  0x79   :  { %v17_v4 = vrot.slane %v16_v3, 4 }
  0x7b   :  { %v18_v5 = vadd.f32 %v17_v4, %v16_v3 }
  0x7d   :  { %v19_v6 = vrot.slane %v18_v5, 2 }
  0x7f   :  { %v20_v7 = vadd.f32 %v19_v6, %v18_v5 }
  0x81   :  { %v21_v8 = vrot.slane %v20_v7, 1 }
  0x83   :  { %v22_v9 = vadd.f32 %v21_v8, %v20_v7 }
  0x85   :  { %v23_v10 = vmul.f32 0.5, %v22_v9 }
  0x87   :  { %46 = vtanh.f32 %v23_v10 }
  0x8d   :  { %v47_v11 = vpop.eup %46 }
  0x8e   :  { %v25_v12 = vadd.f32 1.0, %v47_v11 }
  0x90   :  { %v26_v13 = vmul.f32 0.5, %v25_v12 }
  0x92   :  { %28 = vst.msk [vmem:[#allocation2] sm:$0x1] %vm27_vm0, %v26_v13 }
  0x93   :  { %39 = dma.vmem_to_hbm [thread:$0]  %s35_s14, 16, %s37_s16, [#allocation3]  }
  0x94   :  { %72 = dma.done.wait [#allocation3], 16  }
  0x95   :  { %73 = vsyncadd [#allocation3], 4294967280 }
  0x96   :  { %44 = vsyncpa [#allocation3], 1 }

</bundles_post_ra>
